<compile_context>
chip_gen: v5e
topology: v5e:2x2
jax: 0.10.0
libtpu: 0.0.40
codegen_flags: <defaults>
</compile_context>

<pallas_src>
import functools

import jax
import jax.numpy as jnp
from jax.experimental import pallas as pl
from jax.experimental.pallas import tpu as pltpu


def _embedding_kernel(*refs, drop_prob, s_tile, seq_len, use_hw_prng, need_bits):
    if need_bits:
        (ids_ref, seed_ref, emb_hbm, pe_ref, bits_ref,
         out_ref, gbuf, sems) = refs
    else:
        (ids_ref, seed_ref, emb_hbm, pe_ref,
         out_ref, gbuf, sems) = refs
        bits_ref = None

    b = pl.program_id(0)
    t = pl.program_id(1)
    base = b * seq_len + t * s_tile

    # ---- multi-row gather: keep all S_TILE row DMAs in flight ---------------
    copies = []
    for r in range(s_tile):                       # static, small unrolled loop
        tok = ids_ref[base + r]                   # SMEM scalar read
        cp = pltpu.make_async_copy(emb_hbm.at[tok], gbuf.at[r], sems.at[r])
        cp.start()
        copies.append(cp)
    for cp in copies:
        cp.wait()

    # ---- fused PE add + dropout on the (S_TILE, D) tile ----------------------
    x = gbuf[...] + pe_ref[...]

    if drop_prob <= 0.0:
        out_ref[...] = x
    elif drop_prob >= 1.0:
        out_ref[...] = jnp.zeros_like(x)
    else:
        if use_hw_prng:
            # TODO(synk): Bernoulli(1-p) keep + 1/(1-p) scale only; cannot be
            # bit-identical to torch's dropout RNG stream.
            pltpu.prng_seed(seed_ref[0], b * pl.num_programs(1) + t)
            bits = pltpu.prng_random_bits(x.shape)
        else:
            bits = bits_ref[...]
        # Integer-domain keep test: keep iff (bits & 0x7fffffff) >= p * 2^31.
        thresh = min(int(round(drop_prob * float(1 << 31))), (1 << 31) - 1)
        r32 = jnp.bitwise_and(bits, jnp.array(0x7FFFFFFF, dtype=bits.dtype))
        keep = r32 >= jnp.array(thresh, dtype=r32.dtype)
        scale = jnp.float32(1.0 / (1.0 - drop_prob))
        out_ref[...] = jnp.where(keep, x * scale, jnp.float32(0.0))


def _pick_s_tile(seq_len):
    for cand in (32, 16, 8):
        if seq_len % cand == 0:
            return cand
    return seq_len  # block equals the full dim -> always a legal BlockSpec


def transformer_embedding(ids, emb_table, pe, seed, drop_prob):
    """ids: (B,S) int32; emb_table: (V,D) f32; pe: (S,D) f32; seed: (1,) int32."""
    B, S = ids.shape
    V, D = emb_table.shape
    assert pe.shape == (S, D)
    drop_prob = float(drop_prob)

    s_tile = _pick_s_tile(S)
    n_t = S // s_tile

    active_dropout = 0.0 < drop_prob < 1.0
    use_hw_prng = active_dropout and (jax.default_backend() == "tpu")
    need_bits = active_dropout and not use_hw_prng

    # Flat 1-D ids for tight SMEM packing (2-D SMEM pads to [8k, 128m] words).
    ids_flat = ids.reshape(-1).astype(jnp.int32)

    in_specs = [
        # Embedding table stays in HBM; rows are gathered with manual DMAs.
        pl.BlockSpec(memory_space=pl.ANY),
        # Positional-encoding tile for this sequence-tile step.
        pl.BlockSpec((s_tile, D), lambda b, t, ids_r, seed_r: (t, 0)),
    ]
    operands = [ids_flat, seed, emb_table, pe]
    if need_bits:
        # Off-TPU fallback: dropout random bits generated outside the kernel.
        bits_key = jax.random.fold_in(jax.random.PRNGKey(0), seed[0])
        bits = jax.random.bits(bits_key, (B, S, D), dtype=jnp.uint32)
        in_specs.append(
            pl.BlockSpec((None, s_tile, D),
                         lambda b, t, ids_r, seed_r: (b, t, 0)))
        operands.append(bits)

    kernel = functools.partial(
        _embedding_kernel,
        drop_prob=drop_prob,
        s_tile=s_tile,
        seq_len=S,
        use_hw_prng=use_hw_prng,
        need_bits=need_bits,
    )

    # Bound scoped VMEM explicitly (v7x: 64 MiB physical / 32 MiB default scoped).
    tile_bytes = s_tile * D * 4
    vmem_limit = min(max(12 * tile_bytes + (2 << 20), 4 << 20), 32 << 20)

    cost = pl.CostEstimate(
        flops=B * S * D,                                   # the PE add
        transcendentals=0,
        bytes_accessed=2 * B * S * D * 4 + B * S * 4 + S * D * 4,
    )

    return pl.pallas_call(
        kernel,
        out_shape=jax.ShapeDtypeStruct((B, S, D), jnp.float32),
        grid_spec=pltpu.PrefetchScalarGridSpec(
            num_scalar_prefetch=2,                 # ids + seed land in SMEM
            grid=(B, n_t),
            in_specs=in_specs,
            out_specs=pl.BlockSpec(
                (None, s_tile, D), lambda b, t, ids_r, seed_r: (b, t, 0)),
            scratch_shapes=[
                pltpu.VMEM((s_tile, D), emb_table.dtype),   # gather buffer
                pltpu.SemaphoreType.DMA((s_tile,)),         # one sem per row DMA
            ],
        ),
        compiler_params=pltpu.CompilerParams(
            dimension_semantics=("parallel", "parallel"),
            vmem_limit_bytes=vmem_limit),
        cost_estimate=cost,
    )(*operands)


def sinusoid_pe(max_len, d_model):
    """Same construction as the PyTorch PositionalEncoding table."""
    pos = jnp.arange(max_len, dtype=jnp.float32)[:, None]
    two_i = jnp.arange(0, d_model, 2, dtype=jnp.float32)[None, :]
    angle = pos / jnp.power(10000.0, two_i / float(d_model))
    pe = jnp.zeros((max_len, d_model), dtype=jnp.float32)
    pe = pe.at[:, 0::2].set(jnp.sin(angle))
    pe = pe.at[:, 1::2].set(jnp.cos(angle))
    return pe


if __name__ == "__main__":
    B, S, V, D, MAX_LEN = 2, 8, 64, 32, 16
    DROP_PROB = 0.1

    key = jax.random.PRNGKey(0)
    k_ids, k_emb = jax.random.split(key)
    ids = jax.random.randint(k_ids, (B, S), 0, V, dtype=jnp.int32)

    # TokenEmbedding = nn.Embedding(vocab, d_model, padding_idx=1): zero row 1.
    emb_table = 0.02 * jax.random.normal(k_emb, (V, D), dtype=jnp.float32)
    emb_table = emb_table.at[1].set(0.0)

    pe = sinusoid_pe(MAX_LEN, D)[:S]          # PositionalEncoding -> pe[:seq_len]
    seed = jnp.array([0], dtype=jnp.int32)

    # Correctness check against a pure-JAX reference with dropout disabled.
    out_nodrop = transformer_embedding(ids, emb_table, pe, seed, 0.0)
    jax.block_until_ready(out_nodrop)
    ref = emb_table[ids] + pe[None, :, :]
    assert jnp.allclose(out_nodrop, ref, atol=1e-5), "mismatch vs JAX reference"

    # Full forward with dropout active (train mode).
    out = transformer_embedding(ids, emb_table, pe, seed, DROP_PROB)
    jax.block_until_ready(out)
    assert out.shape == (B, S, D)
    assert bool(jnp.all(jnp.isfinite(out)))
    print("KERNEL_OK")
</pallas_src>

<mosaic_0001>
module attributes {stable_mosaic.version = 11 : i64} {
  func.func @_embedding_kernel(%arg0: i32, %arg1: i32, %arg2: memref<16xi32, #tpu.memory_space<smem>>, %arg3: memref<1xi32, #tpu.memory_space<smem>>, %arg4: memref<64x32xf32, #tpu.memory_space<any>>, %arg5: memref<8x32xf32, #tpu.memory_space<vmem>>, %arg6: memref<1x8x32xf32, #tpu.memory_space<vmem>>, %arg7: memref<8x32xf32, #tpu.memory_space<vmem>>, %arg8: memref<8x!tpu.dma_semaphore, #tpu.memory_space<semaphore_mem>>) attributes {dimension_semantics = [#tpu.dimension_semantics<parallel>, #tpu.dimension_semantics<parallel>], iteration_bounds = array<i64: 2, 1>, scalar_prefetch = 2 : i64, scratch_operands = 2 : i64, tpu.core_type = #tpu.core_type<tc>, window_params = [{}, {transform_indices = @transform_1, window_bounds = array<i64: 8, 32>}, {transform_indices = @transform_2, window_bounds = array<i64: 1, 8, 32>}]} {
    %c8_i32 = arith.constant 8 : i32
    %0 = arith.muli %arg0, %c8_i32 : i32
    %c8_i32_0 = arith.constant 8 : i32
    %1 = arith.muli %arg1, %c8_i32_0 : i32
    %2 = arith.addi %0, %1 : i32
    %c0_i32 = arith.constant 0 : i32
    %3 = arith.addi %2, %c0_i32 : i32
    %4 = arith.index_cast %3 : i32 to index
    %5 = memref.load %arg2[%4] : memref<16xi32, #tpu.memory_space<smem>>
    %c0_i32_1 = arith.constant 0 : i32
    %c0_i32_2 = arith.constant 0 : i32
    %c0_i32_3 = arith.constant 0 : i32
    %6 = tpu.memref_slice %arg4[%5, %c0_i32_3] : memref<64x32xf32, #tpu.memory_space<any>> -> memref<1x32xf32, #tpu.memory_space<any>>
    %7 = tpu.memref_squeeze %6 : memref<1x32xf32, #tpu.memory_space<any>> -> memref<32xf32, #tpu.memory_space<any>>
    %c0_i32_4 = arith.constant 0 : i32
    %8 = tpu.memref_slice %arg7[%c0_i32_1, %c0_i32_4] : memref<8x32xf32, #tpu.memory_space<vmem>> -> memref<1x32xf32, #tpu.memory_space<vmem>>
    %9 = tpu.memref_squeeze %8 : memref<1x32xf32, #tpu.memory_space<vmem>> -> memref<32xf32, #tpu.memory_space<vmem>>
    %10 = tpu.memref_slice %arg8[%c0_i32_2] : memref<8x!tpu.dma_semaphore, #tpu.memory_space<semaphore_mem>> -> memref<1x!tpu.dma_semaphore, #tpu.memory_space<semaphore_mem>>
    %11 = tpu.memref_squeeze %10 : memref<1x!tpu.dma_semaphore, #tpu.memory_space<semaphore_mem>> -> memref<!tpu.dma_semaphore, #tpu.memory_space<semaphore_mem>>
    tpu.enqueue_dma source(%7 : memref<32xf32, #tpu.memory_space<any>>) target(%9 : memref<32xf32, #tpu.memory_space<vmem>>) target_semaphore(%11 : memref<!tpu.dma_semaphore, #tpu.memory_space<semaphore_mem>>)
    %c1_i32 = arith.constant 1 : i32
    %12 = arith.addi %2, %c1_i32 : i32
    %13 = arith.index_cast %12 : i32 to index
    %14 = memref.load %arg2[%13] : memref<16xi32, #tpu.memory_space<smem>>
    %c1_i32_5 = arith.constant 1 : i32
    %c1_i32_6 = arith.constant 1 : i32
    %c0_i32_7 = arith.constant 0 : i32
    %15 = tpu.memref_slice %arg4[%14, %c0_i32_7] : memref<64x32xf32, #tpu.memory_space<any>> -> memref<1x32xf32, #tpu.memory_space<any>>
    %16 = tpu.memref_squeeze %15 : memref<1x32xf32, #tpu.memory_space<any>> -> memref<32xf32, #tpu.memory_space<any>>
    %c0_i32_8 = arith.constant 0 : i32
    %17 = tpu.memref_slice %arg7[%c1_i32_5, %c0_i32_8] : memref<8x32xf32, #tpu.memory_space<vmem>> -> memref<1x32xf32, #tpu.memory_space<vmem>>
    %18 = tpu.memref_squeeze %17 : memref<1x32xf32, #tpu.memory_space<vmem>> -> memref<32xf32, #tpu.memory_space<vmem>>
    %19 = tpu.memref_slice %arg8[%c1_i32_6] : memref<8x!tpu.dma_semaphore, #tpu.memory_space<semaphore_mem>> -> memref<1x!tpu.dma_semaphore, #tpu.memory_space<semaphore_mem>>
    %20 = tpu.memref_squeeze %19 : memref<1x!tpu.dma_semaphore, #tpu.memory_space<semaphore_mem>> -> memref<!tpu.dma_semaphore, #tpu.memory_space<semaphore_mem>>
    tpu.enqueue_dma source(%16 : memref<32xf32, #tpu.memory_space<any>>) target(%18 : memref<32xf32, #tpu.memory_space<vmem>>) target_semaphore(%20 : memref<!tpu.dma_semaphore, #tpu.memory_space<semaphore_mem>>)
    %c2_i32 = arith.constant 2 : i32
    %21 = arith.addi %2, %c2_i32 : i32
    %22 = arith.index_cast %21 : i32 to index
    %23 = memref.load %arg2[%22] : memref<16xi32, #tpu.memory_space<smem>>
    %c2_i32_9 = arith.constant 2 : i32
    %c2_i32_10 = arith.constant 2 : i32
    %c0_i32_11 = arith.constant 0 : i32
    %24 = tpu.memref_slice %arg4[%23, %c0_i32_11] : memref<64x32xf32, #tpu.memory_space<any>> -> memref<1x32xf32, #tpu.memory_space<any>>
    %25 = tpu.memref_squeeze %24 : memref<1x32xf32, #tpu.memory_space<any>> -> memref<32xf32, #tpu.memory_space<any>>
    %c0_i32_12 = arith.constant 0 : i32
    %26 = tpu.memref_slice %arg7[%c2_i32_9, %c0_i32_12] : memref<8x32xf32, #tpu.memory_space<vmem>> -> memref<1x32xf32, #tpu.memory_space<vmem>>
    %27 = tpu.memref_squeeze %26 : memref<1x32xf32, #tpu.memory_space<vmem>> -> memref<32xf32, #tpu.memory_space<vmem>>
    %28 = tpu.memref_slice %arg8[%c2_i32_10] : memref<8x!tpu.dma_semaphore, #tpu.memory_space<semaphore_mem>> -> memref<1x!tpu.dma_semaphore, #tpu.memory_space<semaphore_mem>>
    %29 = tpu.memref_squeeze %28 : memref<1x!tpu.dma_semaphore, #tpu.memory_space<semaphore_mem>> -> memref<!tpu.dma_semaphore, #tpu.memory_space<semaphore_mem>>
    tpu.enqueue_dma source(%25 : memref<32xf32, #tpu.memory_space<any>>) target(%27 : memref<32xf32, #tpu.memory_space<vmem>>) target_semaphore(%29 : memref<!tpu.dma_semaphore, #tpu.memory_space<semaphore_mem>>)
    %c3_i32 = arith.constant 3 : i32
    %30 = arith.addi %2, %c3_i32 : i32
    %31 = arith.index_cast %30 : i32 to index
    %32 = memref.load %arg2[%31] : memref<16xi32, #tpu.memory_space<smem>>
    %c3_i32_13 = arith.constant 3 : i32
    %c3_i32_14 = arith.constant 3 : i32
    %c0_i32_15 = arith.constant 0 : i32
    %33 = tpu.memref_slice %arg4[%32, %c0_i32_15] : memref<64x32xf32, #tpu.memory_space<any>> -> memref<1x32xf32, #tpu.memory_space<any>>
    %34 = tpu.memref_squeeze %33 : memref<1x32xf32, #tpu.memory_space<any>> -> memref<32xf32, #tpu.memory_space<any>>
    %c0_i32_16 = arith.constant 0 : i32
    %35 = tpu.memref_slice %arg7[%c3_i32_13, %c0_i32_16] : memref<8x32xf32, #tpu.memory_space<vmem>> -> memref<1x32xf32, #tpu.memory_space<vmem>>
    %36 = tpu.memref_squeeze %35 : memref<1x32xf32, #tpu.memory_space<vmem>> -> memref<32xf32, #tpu.memory_space<vmem>>
    %37 = tpu.memref_slice %arg8[%c3_i32_14] : memref<8x!tpu.dma_semaphore, #tpu.memory_space<semaphore_mem>> -> memref<1x!tpu.dma_semaphore, #tpu.memory_space<semaphore_mem>>
    %38 = tpu.memref_squeeze %37 : memref<1x!tpu.dma_semaphore, #tpu.memory_space<semaphore_mem>> -> memref<!tpu.dma_semaphore, #tpu.memory_space<semaphore_mem>>
    tpu.enqueue_dma source(%34 : memref<32xf32, #tpu.memory_space<any>>) target(%36 : memref<32xf32, #tpu.memory_space<vmem>>) target_semaphore(%38 : memref<!tpu.dma_semaphore, #tpu.memory_space<semaphore_mem>>)
    %c4_i32 = arith.constant 4 : i32
    %39 = arith.addi %2, %c4_i32 : i32
    %40 = arith.index_cast %39 : i32 to index
    %41 = memref.load %arg2[%40] : memref<16xi32, #tpu.memory_space<smem>>
    %c4_i32_17 = arith.constant 4 : i32
    %c4_i32_18 = arith.constant 4 : i32
    %c0_i32_19 = arith.constant 0 : i32
    %42 = tpu.memref_slice %arg4[%41, %c0_i32_19] : memref<64x32xf32, #tpu.memory_space<any>> -> memref<1x32xf32, #tpu.memory_space<any>>
    %43 = tpu.memref_squeeze %42 : memref<1x32xf32, #tpu.memory_space<any>> -> memref<32xf32, #tpu.memory_space<any>>
    %c0_i32_20 = arith.constant 0 : i32
    %44 = tpu.memref_slice %arg7[%c4_i32_17, %c0_i32_20] : memref<8x32xf32, #tpu.memory_space<vmem>> -> memref<1x32xf32, #tpu.memory_space<vmem>>
    %45 = tpu.memref_squeeze %44 : memref<1x32xf32, #tpu.memory_space<vmem>> -> memref<32xf32, #tpu.memory_space<vmem>>
    %46 = tpu.memref_slice %arg8[%c4_i32_18] : memref<8x!tpu.dma_semaphore, #tpu.memory_space<semaphore_mem>> -> memref<1x!tpu.dma_semaphore, #tpu.memory_space<semaphore_mem>>
    %47 = tpu.memref_squeeze %46 : memref<1x!tpu.dma_semaphore, #tpu.memory_space<semaphore_mem>> -> memref<!tpu.dma_semaphore, #tpu.memory_space<semaphore_mem>>
    tpu.enqueue_dma source(%43 : memref<32xf32, #tpu.memory_space<any>>) target(%45 : memref<32xf32, #tpu.memory_space<vmem>>) target_semaphore(%47 : memref<!tpu.dma_semaphore, #tpu.memory_space<semaphore_mem>>)
    %c5_i32 = arith.constant 5 : i32
    %48 = arith.addi %2, %c5_i32 : i32
    %49 = arith.index_cast %48 : i32 to index
    %50 = memref.load %arg2[%49] : memref<16xi32, #tpu.memory_space<smem>>
    %c5_i32_21 = arith.constant 5 : i32
    %c5_i32_22 = arith.constant 5 : i32
    %c0_i32_23 = arith.constant 0 : i32
    %51 = tpu.memref_slice %arg4[%50, %c0_i32_23] : memref<64x32xf32, #tpu.memory_space<any>> -> memref<1x32xf32, #tpu.memory_space<any>>
    %52 = tpu.memref_squeeze %51 : memref<1x32xf32, #tpu.memory_space<any>> -> memref<32xf32, #tpu.memory_space<any>>
    %c0_i32_24 = arith.constant 0 : i32
    %53 = tpu.memref_slice %arg7[%c5_i32_21, %c0_i32_24] : memref<8x32xf32, #tpu.memory_space<vmem>> -> memref<1x32xf32, #tpu.memory_space<vmem>>
    %54 = tpu.memref_squeeze %53 : memref<1x32xf32, #tpu.memory_space<vmem>> -> memref<32xf32, #tpu.memory_space<vmem>>
    %55 = tpu.memref_slice %arg8[%c5_i32_22] : memref<8x!tpu.dma_semaphore, #tpu.memory_space<semaphore_mem>> -> memref<1x!tpu.dma_semaphore, #tpu.memory_space<semaphore_mem>>
    %56 = tpu.memref_squeeze %55 : memref<1x!tpu.dma_semaphore, #tpu.memory_space<semaphore_mem>> -> memref<!tpu.dma_semaphore, #tpu.memory_space<semaphore_mem>>
    tpu.enqueue_dma source(%52 : memref<32xf32, #tpu.memory_space<any>>) target(%54 : memref<32xf32, #tpu.memory_space<vmem>>) target_semaphore(%56 : memref<!tpu.dma_semaphore, #tpu.memory_space<semaphore_mem>>)
    %c6_i32 = arith.constant 6 : i32
    %57 = arith.addi %2, %c6_i32 : i32
    %58 = arith.index_cast %57 : i32 to index
    %59 = memref.load %arg2[%58] : memref<16xi32, #tpu.memory_space<smem>>
    %c6_i32_25 = arith.constant 6 : i32
    %c6_i32_26 = arith.constant 6 : i32
    %c0_i32_27 = arith.constant 0 : i32
    %60 = tpu.memref_slice %arg4[%59, %c0_i32_27] : memref<64x32xf32, #tpu.memory_space<any>> -> memref<1x32xf32, #tpu.memory_space<any>>
    %61 = tpu.memref_squeeze %60 : memref<1x32xf32, #tpu.memory_space<any>> -> memref<32xf32, #tpu.memory_space<any>>
    %c0_i32_28 = arith.constant 0 : i32
    %62 = tpu.memref_slice %arg7[%c6_i32_25, %c0_i32_28] : memref<8x32xf32, #tpu.memory_space<vmem>> -> memref<1x32xf32, #tpu.memory_space<vmem>>
    %63 = tpu.memref_squeeze %62 : memref<1x32xf32, #tpu.memory_space<vmem>> -> memref<32xf32, #tpu.memory_space<vmem>>
    %64 = tpu.memref_slice %arg8[%c6_i32_26] : memref<8x!tpu.dma_semaphore, #tpu.memory_space<semaphore_mem>> -> memref<1x!tpu.dma_semaphore, #tpu.memory_space<semaphore_mem>>
    %65 = tpu.memref_squeeze %64 : memref<1x!tpu.dma_semaphore, #tpu.memory_space<semaphore_mem>> -> memref<!tpu.dma_semaphore, #tpu.memory_space<semaphore_mem>>
    tpu.enqueue_dma source(%61 : memref<32xf32, #tpu.memory_space<any>>) target(%63 : memref<32xf32, #tpu.memory_space<vmem>>) target_semaphore(%65 : memref<!tpu.dma_semaphore, #tpu.memory_space<semaphore_mem>>)
    %c7_i32 = arith.constant 7 : i32
    %66 = arith.addi %2, %c7_i32 : i32
    %67 = arith.index_cast %66 : i32 to index
    %68 = memref.load %arg2[%67] : memref<16xi32, #tpu.memory_space<smem>>
    %c7_i32_29 = arith.constant 7 : i32
    %c7_i32_30 = arith.constant 7 : i32
    %c0_i32_31 = arith.constant 0 : i32
    %69 = tpu.memref_slice %arg4[%68, %c0_i32_31] : memref<64x32xf32, #tpu.memory_space<any>> -> memref<1x32xf32, #tpu.memory_space<any>>
    %70 = tpu.memref_squeeze %69 : memref<1x32xf32, #tpu.memory_space<any>> -> memref<32xf32, #tpu.memory_space<any>>
    %c0_i32_32 = arith.constant 0 : i32
    %71 = tpu.memref_slice %arg7[%c7_i32_29, %c0_i32_32] : memref<8x32xf32, #tpu.memory_space<vmem>> -> memref<1x32xf32, #tpu.memory_space<vmem>>
    %72 = tpu.memref_squeeze %71 : memref<1x32xf32, #tpu.memory_space<vmem>> -> memref<32xf32, #tpu.memory_space<vmem>>
    %73 = tpu.memref_slice %arg8[%c7_i32_30] : memref<8x!tpu.dma_semaphore, #tpu.memory_space<semaphore_mem>> -> memref<1x!tpu.dma_semaphore, #tpu.memory_space<semaphore_mem>>
    %74 = tpu.memref_squeeze %73 : memref<1x!tpu.dma_semaphore, #tpu.memory_space<semaphore_mem>> -> memref<!tpu.dma_semaphore, #tpu.memory_space<semaphore_mem>>
    tpu.enqueue_dma source(%70 : memref<32xf32, #tpu.memory_space<any>>) target(%72 : memref<32xf32, #tpu.memory_space<vmem>>) target_semaphore(%74 : memref<!tpu.dma_semaphore, #tpu.memory_space<semaphore_mem>>)
    %c0_i32_33 = arith.constant 0 : i32
    %c0_i32_34 = arith.constant 0 : i32
    %c0_i32_35 = arith.constant 0 : i32
    %75 = tpu.memref_slice %arg4[%5, %c0_i32_35] : memref<64x32xf32, #tpu.memory_space<any>> -> memref<1x32xf32, #tpu.memory_space<any>>
    %76 = tpu.memref_squeeze %75 : memref<1x32xf32, #tpu.memory_space<any>> -> memref<32xf32, #tpu.memory_space<any>>
    %c0_i32_36 = arith.constant 0 : i32
    %77 = tpu.memref_slice %arg7[%c0_i32_33, %c0_i32_36] : memref<8x32xf32, #tpu.memory_space<vmem>> -> memref<1x32xf32, #tpu.memory_space<vmem>>
    %78 = tpu.memref_squeeze %77 : memref<1x32xf32, #tpu.memory_space<vmem>> -> memref<32xf32, #tpu.memory_space<vmem>>
    %79 = tpu.memref_slice %arg8[%c0_i32_34] : memref<8x!tpu.dma_semaphore, #tpu.memory_space<semaphore_mem>> -> memref<1x!tpu.dma_semaphore, #tpu.memory_space<semaphore_mem>>
    %80 = tpu.memref_squeeze %79 : memref<1x!tpu.dma_semaphore, #tpu.memory_space<semaphore_mem>> -> memref<!tpu.dma_semaphore, #tpu.memory_space<semaphore_mem>>
    tpu.wait_dma2 semaphore(%80 : memref<!tpu.dma_semaphore, #tpu.memory_space<semaphore_mem>>) src(%76 : memref<32xf32, #tpu.memory_space<any>>) dst(%78 : memref<32xf32, #tpu.memory_space<vmem>>)
    %c1_i32_37 = arith.constant 1 : i32
    %c1_i32_38 = arith.constant 1 : i32
    %c0_i32_39 = arith.constant 0 : i32
    %81 = tpu.memref_slice %arg4[%14, %c0_i32_39] : memref<64x32xf32, #tpu.memory_space<any>> -> memref<1x32xf32, #tpu.memory_space<any>>
    %82 = tpu.memref_squeeze %81 : memref<1x32xf32, #tpu.memory_space<any>> -> memref<32xf32, #tpu.memory_space<any>>
    %c0_i32_40 = arith.constant 0 : i32
    %83 = tpu.memref_slice %arg7[%c1_i32_37, %c0_i32_40] : memref<8x32xf32, #tpu.memory_space<vmem>> -> memref<1x32xf32, #tpu.memory_space<vmem>>
    %84 = tpu.memref_squeeze %83 : memref<1x32xf32, #tpu.memory_space<vmem>> -> memref<32xf32, #tpu.memory_space<vmem>>
    %85 = tpu.memref_slice %arg8[%c1_i32_38] : memref<8x!tpu.dma_semaphore, #tpu.memory_space<semaphore_mem>> -> memref<1x!tpu.dma_semaphore, #tpu.memory_space<semaphore_mem>>
    %86 = tpu.memref_squeeze %85 : memref<1x!tpu.dma_semaphore, #tpu.memory_space<semaphore_mem>> -> memref<!tpu.dma_semaphore, #tpu.memory_space<semaphore_mem>>
    tpu.wait_dma2 semaphore(%86 : memref<!tpu.dma_semaphore, #tpu.memory_space<semaphore_mem>>) src(%82 : memref<32xf32, #tpu.memory_space<any>>) dst(%84 : memref<32xf32, #tpu.memory_space<vmem>>)
    %c2_i32_41 = arith.constant 2 : i32
    %c2_i32_42 = arith.constant 2 : i32
    %c0_i32_43 = arith.constant 0 : i32
    %87 = tpu.memref_slice %arg4[%23, %c0_i32_43] : memref<64x32xf32, #tpu.memory_space<any>> -> memref<1x32xf32, #tpu.memory_space<any>>
    %88 = tpu.memref_squeeze %87 : memref<1x32xf32, #tpu.memory_space<any>> -> memref<32xf32, #tpu.memory_space<any>>
    %c0_i32_44 = arith.constant 0 : i32
    %89 = tpu.memref_slice %arg7[%c2_i32_41, %c0_i32_44] : memref<8x32xf32, #tpu.memory_space<vmem>> -> memref<1x32xf32, #tpu.memory_space<vmem>>
    %90 = tpu.memref_squeeze %89 : memref<1x32xf32, #tpu.memory_space<vmem>> -> memref<32xf32, #tpu.memory_space<vmem>>
    %91 = tpu.memref_slice %arg8[%c2_i32_42] : memref<8x!tpu.dma_semaphore, #tpu.memory_space<semaphore_mem>> -> memref<1x!tpu.dma_semaphore, #tpu.memory_space<semaphore_mem>>
    %92 = tpu.memref_squeeze %91 : memref<1x!tpu.dma_semaphore, #tpu.memory_space<semaphore_mem>> -> memref<!tpu.dma_semaphore, #tpu.memory_space<semaphore_mem>>
    tpu.wait_dma2 semaphore(%92 : memref<!tpu.dma_semaphore, #tpu.memory_space<semaphore_mem>>) src(%88 : memref<32xf32, #tpu.memory_space<any>>) dst(%90 : memref<32xf32, #tpu.memory_space<vmem>>)
    %c3_i32_45 = arith.constant 3 : i32
    %c3_i32_46 = arith.constant 3 : i32
    %c0_i32_47 = arith.constant 0 : i32
    %93 = tpu.memref_slice %arg4[%32, %c0_i32_47] : memref<64x32xf32, #tpu.memory_space<any>> -> memref<1x32xf32, #tpu.memory_space<any>>
    %94 = tpu.memref_squeeze %93 : memref<1x32xf32, #tpu.memory_space<any>> -> memref<32xf32, #tpu.memory_space<any>>
    %c0_i32_48 = arith.constant 0 : i32
    %95 = tpu.memref_slice %arg7[%c3_i32_45, %c0_i32_48] : memref<8x32xf32, #tpu.memory_space<vmem>> -> memref<1x32xf32, #tpu.memory_space<vmem>>
    %96 = tpu.memref_squeeze %95 : memref<1x32xf32, #tpu.memory_space<vmem>> -> memref<32xf32, #tpu.memory_space<vmem>>
    %97 = tpu.memref_slice %arg8[%c3_i32_46] : memref<8x!tpu.dma_semaphore, #tpu.memory_space<semaphore_mem>> -> memref<1x!tpu.dma_semaphore, #tpu.memory_space<semaphore_mem>>
    %98 = tpu.memref_squeeze %97 : memref<1x!tpu.dma_semaphore, #tpu.memory_space<semaphore_mem>> -> memref<!tpu.dma_semaphore, #tpu.memory_space<semaphore_mem>>
    tpu.wait_dma2 semaphore(%98 : memref<!tpu.dma_semaphore, #tpu.memory_space<semaphore_mem>>) src(%94 : memref<32xf32, #tpu.memory_space<any>>) dst(%96 : memref<32xf32, #tpu.memory_space<vmem>>)
    %c4_i32_49 = arith.constant 4 : i32
    %c4_i32_50 = arith.constant 4 : i32
    %c0_i32_51 = arith.constant 0 : i32
    %99 = tpu.memref_slice %arg4[%41, %c0_i32_51] : memref<64x32xf32, #tpu.memory_space<any>> -> memref<1x32xf32, #tpu.memory_space<any>>
    %100 = tpu.memref_squeeze %99 : memref<1x32xf32, #tpu.memory_space<any>> -> memref<32xf32, #tpu.memory_space<any>>
    %c0_i32_52 = arith.constant 0 : i32
    %101 = tpu.memref_slice %arg7[%c4_i32_49, %c0_i32_52] : memref<8x32xf32, #tpu.memory_space<vmem>> -> memref<1x32xf32, #tpu.memory_space<vmem>>
    %102 = tpu.memref_squeeze %101 : memref<1x32xf32, #tpu.memory_space<vmem>> -> memref<32xf32, #tpu.memory_space<vmem>>
    %103 = tpu.memref_slice %arg8[%c4_i32_50] : memref<8x!tpu.dma_semaphore, #tpu.memory_space<semaphore_mem>> -> memref<1x!tpu.dma_semaphore, #tpu.memory_space<semaphore_mem>>
    %104 = tpu.memref_squeeze %103 : memref<1x!tpu.dma_semaphore, #tpu.memory_space<semaphore_mem>> -> memref<!tpu.dma_semaphore, #tpu.memory_space<semaphore_mem>>
    tpu.wait_dma2 semaphore(%104 : memref<!tpu.dma_semaphore, #tpu.memory_space<semaphore_mem>>) src(%100 : memref<32xf32, #tpu.memory_space<any>>) dst(%102 : memref<32xf32, #tpu.memory_space<vmem>>)
    %c5_i32_53 = arith.constant 5 : i32
    %c5_i32_54 = arith.constant 5 : i32
    %c0_i32_55 = arith.constant 0 : i32
    %105 = tpu.memref_slice %arg4[%50, %c0_i32_55] : memref<64x32xf32, #tpu.memory_space<any>> -> memref<1x32xf32, #tpu.memory_space<any>>
    %106 = tpu.memref_squeeze %105 : memref<1x32xf32, #tpu.memory_space<any>> -> memref<32xf32, #tpu.memory_space<any>>
    %c0_i32_56 = arith.constant 0 : i32
    %107 = tpu.memref_slice %arg7[%c5_i32_53, %c0_i32_56] : memref<8x32xf32, #tpu.memory_space<vmem>> -> memref<1x32xf32, #tpu.memory_space<vmem>>
    %108 = tpu.memref_squeeze %107 : memref<1x32xf32, #tpu.memory_space<vmem>> -> memref<32xf32, #tpu.memory_space<vmem>>
    %109 = tpu.memref_slice %arg8[%c5_i32_54] : memref<8x!tpu.dma_semaphore, #tpu.memory_space<semaphore_mem>> -> memref<1x!tpu.dma_semaphore, #tpu.memory_space<semaphore_mem>>
    %110 = tpu.memref_squeeze %109 : memref<1x!tpu.dma_semaphore, #tpu.memory_space<semaphore_mem>> -> memref<!tpu.dma_semaphore, #tpu.memory_space<semaphore_mem>>
    tpu.wait_dma2 semaphore(%110 : memref<!tpu.dma_semaphore, #tpu.memory_space<semaphore_mem>>) src(%106 : memref<32xf32, #tpu.memory_space<any>>) dst(%108 : memref<32xf32, #tpu.memory_space<vmem>>)
    %c6_i32_57 = arith.constant 6 : i32
    %c6_i32_58 = arith.constant 6 : i32
    %c0_i32_59 = arith.constant 0 : i32
    %111 = tpu.memref_slice %arg4[%59, %c0_i32_59] : memref<64x32xf32, #tpu.memory_space<any>> -> memref<1x32xf32, #tpu.memory_space<any>>
    %112 = tpu.memref_squeeze %111 : memref<1x32xf32, #tpu.memory_space<any>> -> memref<32xf32, #tpu.memory_space<any>>
    %c0_i32_60 = arith.constant 0 : i32
    %113 = tpu.memref_slice %arg7[%c6_i32_57, %c0_i32_60] : memref<8x32xf32, #tpu.memory_space<vmem>> -> memref<1x32xf32, #tpu.memory_space<vmem>>
    %114 = tpu.memref_squeeze %113 : memref<1x32xf32, #tpu.memory_space<vmem>> -> memref<32xf32, #tpu.memory_space<vmem>>
    %115 = tpu.memref_slice %arg8[%c6_i32_58] : memref<8x!tpu.dma_semaphore, #tpu.memory_space<semaphore_mem>> -> memref<1x!tpu.dma_semaphore, #tpu.memory_space<semaphore_mem>>
    %116 = tpu.memref_squeeze %115 : memref<1x!tpu.dma_semaphore, #tpu.memory_space<semaphore_mem>> -> memref<!tpu.dma_semaphore, #tpu.memory_space<semaphore_mem>>
    tpu.wait_dma2 semaphore(%116 : memref<!tpu.dma_semaphore, #tpu.memory_space<semaphore_mem>>) src(%112 : memref<32xf32, #tpu.memory_space<any>>) dst(%114 : memref<32xf32, #tpu.memory_space<vmem>>)
    %c7_i32_61 = arith.constant 7 : i32
    %c7_i32_62 = arith.constant 7 : i32
    %c0_i32_63 = arith.constant 0 : i32
    %117 = tpu.memref_slice %arg4[%68, %c0_i32_63] : memref<64x32xf32, #tpu.memory_space<any>> -> memref<1x32xf32, #tpu.memory_space<any>>
    %118 = tpu.memref_squeeze %117 : memref<1x32xf32, #tpu.memory_space<any>> -> memref<32xf32, #tpu.memory_space<any>>
    %c0_i32_64 = arith.constant 0 : i32
    %119 = tpu.memref_slice %arg7[%c7_i32_61, %c0_i32_64] : memref<8x32xf32, #tpu.memory_space<vmem>> -> memref<1x32xf32, #tpu.memory_space<vmem>>
    %120 = tpu.memref_squeeze %119 : memref<1x32xf32, #tpu.memory_space<vmem>> -> memref<32xf32, #tpu.memory_space<vmem>>
    %121 = tpu.memref_slice %arg8[%c7_i32_62] : memref<8x!tpu.dma_semaphore, #tpu.memory_space<semaphore_mem>> -> memref<1x!tpu.dma_semaphore, #tpu.memory_space<semaphore_mem>>
    %122 = tpu.memref_squeeze %121 : memref<1x!tpu.dma_semaphore, #tpu.memory_space<semaphore_mem>> -> memref<!tpu.dma_semaphore, #tpu.memory_space<semaphore_mem>>
    tpu.wait_dma2 semaphore(%122 : memref<!tpu.dma_semaphore, #tpu.memory_space<semaphore_mem>>) src(%118 : memref<32xf32, #tpu.memory_space<any>>) dst(%120 : memref<32xf32, #tpu.memory_space<vmem>>)
    %c0 = arith.constant 0 : index
    %c0_65 = arith.constant 0 : index
    %123 = vector.load %arg7[%c0, %c0_65] : memref<8x32xf32, #tpu.memory_space<vmem>>, vector<8x32xf32>
    %c0_66 = arith.constant 0 : index
    %c0_67 = arith.constant 0 : index
    %124 = vector.load %arg5[%c0_66, %c0_67] : memref<8x32xf32, #tpu.memory_space<vmem>>, vector<8x32xf32>
    %125 = arith.addf %123, %124 : vector<8x32xf32>
    %c0_68 = arith.constant 0 : index
    %c0_69 = arith.constant 0 : index
    %c0_70 = arith.constant 0 : index
    %126 = vector.load %arg6[%c0_68, %c0_69, %c0_70] : memref<1x8x32xf32, #tpu.memory_space<vmem>>, vector<1x8x32xf32>
    %127 = vector.shape_cast %126 : vector<1x8x32xf32> to vector<8x32xf32>
    %128 = vector.shape_cast %125 : vector<8x32xf32> to vector<1x8x32xf32>
    tpu.vector_store %arg6[%c0_68, %c0_69, %c0_70], %128 {strides = array<i32>} : memref<1x8x32xf32, #tpu.memory_space<vmem>>, vector<1x8x32xf32>,
    return
  }
  func.func @transform_1(%arg0: i32, %arg1: i32, %arg2: memref<16xi32, #tpu.memory_space<smem>>, %arg3: memref<1xi32, #tpu.memory_space<smem>>) -> (i32, i32) {
    %c0_i32 = arith.constant 0 : i32
    %c0_i32_0 = arith.constant 0 : i32
    return %arg1, %c0_i32 : i32, i32
  }
  func.func @transform_2(%arg0: i32, %arg1: i32, %arg2: memref<16xi32, #tpu.memory_space<smem>>, %arg3: memref<1xi32, #tpu.memory_space<smem>>) -> (i32, i32, i32) {
    %c0_i32 = arith.constant 0 : i32
    %c0_i32_0 = arith.constant 0 : i32
    return %arg0, %arg1, %c0_i32 : i32, i32, i32
  }
}

</mosaic_0001>

<bundles_post_ra>
// kernel: tpu_custom_call.1
= control target key start
LH: loop header
LB: loop body
LE: loop exit
PB: predicated region body
PF: predicated region fallthrough
CT: control target
= control target key end

     0   :  { %s839_s18 = smov [#allocation5]   ;;  %s1006_s0 = inlined_call_operand.vmem [shape: s32[16], index: 0, kind: input, shape index: {}]   ;;  %s1007_s1 = inlined_call_operand.<no memory space> [shape: s32[1], index: 1, kind: input, shape index: {}]   ;;  %s1008_s2 = inlined_call_operand.vmem [shape: f32[64,32], index: 2, kind: input, shape index: {}]   ;;  %s1009_s3 = inlined_call_operand.vmem [shape: f32[8,32], index: 3, kind: input, shape index: {}]   ;;  %s1010_s4 = inlined_call_operand.hbm [shape: f32[2,8,32], index: 4, kind: output, shape index: {}]  }
   0x1   :  { %s10_s17 = sshll.u32 %s1006_s0, 4  ;;  %s11_s17 = int_to_ptr.vmem [resolvable:$true] %s10_s17 }
   0x2   :  { %13 = dma.vmem_to_smem %s11_s17, 16, %s839_s18, [#allocation4] }
   0x3   :  { %793 = dma.done.wait [#allocation4], 16 }
   0x4   :  { %794 = vsyncadd [#allocation4], 4294967280 }
   0x5   :  { %17 = sfence }
   0x6   :  { %18 = vsyncpa [#allocation8], 0 }
   0x7   :  { %20 = vsyncpa [#allocation8 + $0x1], 0  ;;  %s868_s1 = smov 0   ;;  %s870_s19 = smov 0  }
   0x8   :  { %s872_s20 = smov 0   ;;  %s874_s21 = smov 0  }
   0x9   :  { %s876_s22 = smov 0   ;;  %s878_s23 = smov 0  }
   0xa LB: > { %s654_s0 = sadd.s32 4294967295, %s837_s23   ;;  %s655_s24 = sadd.s32 4294967294, %s837_s23   ;;  %s837_s23 = sphi %s878_s23, %s26_s23   ;;  %s833_s22 = sphi %s876_s22, %s1017_s22   ;;  %s829_s21 = sphi %s874_s21, %s1016_s21   ;;  %s825_s20 = sphi %s872_s20, %s1015_s20   ;;  %s821_s19 = sphi %s870_s19, %s1014_s19   ;;  %s817_s1 = sphi %s868_s1, %s1013_s1  }
   0xb   : > { %s38_s25 = sadd.s32 1, %s833_s22  ;;  %s73_s26 = sadd.s32 1, %s825_s20 }
   0xc   : > { %p40_p0 = scmp.ge.s32.totalorder %s38_s25, 2  ;;  %p83_p1 = scmp.ne.s32.totalorder %s825_s20, %s821_s19 }
   0xd   : > { %p84_p2 = scmp.eq.s32.totalorder %s654_s0, 1  ;;  %p89_p3 = scmp.ne.s32.totalorder %s821_s19, %s817_s1 }
   0xe   : > { %s1019_s25 = smov (%p40_p0, %s38_s25), 0  ;;  %p90_p5 = scmp.eq.s32.totalorder %s655_s24, 1 }
   0xf   : > { %p906_p4 = por %p84_p2, %p83_p1  ;;  %s68_s28 = ssub.s32 %s833_s22, %s1019_s25 }
  0x10   : > { %p658_p6 = scmp.ge.s32.totalorder %s837_s23, 1  ;;  %p71_p7 = scmp.eq.s32.totalorder %s68_s28, 0 }
  0x11   : > { %p913_p8 = por %p90_p5, %p89_p3  ;;  %p115_p9 = scmp.lt.s32.totalorder %s837_s23, 3 }
  0x12   : > { %s919_s30 = scalar_select %p71_p7, %s825_s20, %s73_s26  }
  0x13   : > { %p116_p10 = pnand %p658_p6, %p115_p9 }
  0x14   : > { %s131_s5 = sand.u32 (!%p116_p10), 1, %s821_s19   ;;  %s922_s6 = sshll.u32 (!%p116_p10), %s829_s21, 3 }
  0x15   : > { %119 = sbr.rel (%p116_p10) target bundleno = 131 (0x83), region = 24  ;;  %s926_s7 = sshll.u32 (!%p116_p10), %s131_s5, 3 }
  0x16   : > { %s141_s8 = sld [smem:[#allocation5 + %s922_s6]] (!%p116_p10)  ;;  %s133_s12 = scalar_lea.vmem (!%p116_p10), [#allocation7], %s926_s7 }
  0x1c   : > { %s142_s11 = scalar_lea.vmem %s1008_s2, %s141_s8 }
  0x1d   : > { %v157_v0 = vld [vmem:[%s142_s11] sm:$0x1] }
  0x1e   : > { %158 = vst [vmem:[#allocation2] sm:$0x1] %v157_v0 }
  0x1f   : > { %176 = vsyncadd [#allocation3], 16  ;;  %s177_s13 = sadd.s32 1, %s922_s6 }
  0x20   : > { %s178_s14 = sld [smem:[#allocation5 + %s177_s13]] }
  0x26   : > { %s179_s17 = scalar_lea.vmem %s1008_s2, %s178_s14 }
  0x27   : > { %v196_v1 = vld [vmem:[%s179_s17] sm:$0x1] }
  0x28   : > { %197 = vst [vmem:[#allocation2 + $0x1] sm:$0x1] %v196_v1 }
  0x29   : > { %215 = vsyncadd [#allocation3 + $0x1], 16  ;;  %s216_s18 = sadd.s32 2, %s922_s6 }
  0x2a   : > { %s217_s21 = sld [smem:[#allocation5 + %s216_s18]] }
  0x30   : > { %s218_s26 = scalar_lea.vmem %s1008_s2, %s217_s21 }
  0x31   : > { %v235_v2 = vld [vmem:[%s218_s26] sm:$0x1] }
  0x32   : > { %236 = vst [vmem:[#allocation2 + $0x2] sm:$0x1] %v235_v2 }
  0x33   : > { %254 = vsyncadd [#allocation3 + $0x2], 16  ;;  %s255_s28 = sadd.s32 3, %s922_s6 }
  0x34   : > { %s256_s8 = sld [smem:[#allocation5 + %s255_s28]] }
  0x3a   : > { %s257_s11 = scalar_lea.vmem %s1008_s2, %s256_s8 }
  0x3b   : > { %v274_v3 = vld [vmem:[%s257_s11] sm:$0x1] }
  0x3c   : > { %275 = vst [vmem:[#allocation2 + $0x3] sm:$0x1] %v274_v3 }
  0x3d   : > { %293 = vsyncadd [#allocation3 + $0x3], 16  ;;  %s294_s13 = sadd.s32 4, %s922_s6 }
  0x3e   : > { %s295_s14 = sld [smem:[#allocation5 + %s294_s13]] }
  0x44   : > { %s296_s17 = scalar_lea.vmem %s1008_s2, %s295_s14 }
  0x45   : > { %v313_v4 = vld [vmem:[%s296_s17] sm:$0x1] }
  0x46   : > { %314 = vst [vmem:[#allocation2 + $0x4] sm:$0x1] %v313_v4 }
  0x47   : > { %332 = vsyncadd [#allocation3 + $0x4], 16  ;;  %s333_s18 = sadd.s32 5, %s922_s6 }
  0x48   : > { %s334_s21 = sld [smem:[#allocation5 + %s333_s18]] }
  0x4e   : > { %s335_s26 = scalar_lea.vmem %s1008_s2, %s334_s21 }
  0x4f   : > { %v352_v5 = vld [vmem:[%s335_s26] sm:$0x1] }
  0x50   : > { %353 = vst [vmem:[#allocation2 + $0x5] sm:$0x1] %v352_v5 }
  0x51   : > { %371 = vsyncadd [#allocation3 + $0x5], 16  ;;  %s372_s28 = sadd.s32 6, %s922_s6 }
  0x52   : > { %s373_s8 = sld [smem:[#allocation5 + %s372_s28]] }
  0x58   : > { %s374_s11 = scalar_lea.vmem %s1008_s2, %s373_s8 }
  0x59   : > { %v391_v6 = vld [vmem:[%s374_s11] sm:$0x1] }
  0x5a   : > { %392 = vst [vmem:[#allocation2 + $0x6] sm:$0x1] %v391_v6 }
  0x5b   : > { %410 = vsyncadd [#allocation3 + $0x6], 16  ;;  %s411_s13 = sadd.s32 7, %s922_s6 }
  0x5c   : > { %s412_s14 = sld [smem:[#allocation5 + %s411_s13]] }
  0x62   : > { %s413_s17 = scalar_lea.vmem %s1008_s2, %s412_s14 }
  0x63   : > { %v430_v7 = vld [vmem:[%s413_s17] sm:$0x1] }
  0x64   : > { %431 = vst [vmem:[#allocation2 + $0x7] sm:$0x1] %v430_v7 }
  0x65   : > { %449 = vsyncadd [#allocation3 + $0x7], 16 }
  0x66   : > { %795 = dma.done.wait [#allocation3], 16 }
  0x67   : > { %796 = vsyncadd [#allocation3], 4294967280 }
  0x68   : > { %797 = dma.done.wait [#allocation3 + $0x1], 16 }
  0x69   : > { %798 = vsyncadd [#allocation3 + $0x1], 4294967280 }
  0x6a   : > { %799 = dma.done.wait [#allocation3 + $0x2], 16 }
  0x6b   : > { %800 = vsyncadd [#allocation3 + $0x2], 4294967280 }
  0x6c   : > { %801 = dma.done.wait [#allocation3 + $0x3], 16 }
  0x6d   : > { %802 = vsyncadd [#allocation3 + $0x3], 4294967280 }
  0x6e   : > { %803 = dma.done.wait [#allocation3 + $0x4], 16 }
  0x6f   : > { %804 = vsyncadd [#allocation3 + $0x4], 4294967280 }
  0x70   : > { %805 = dma.done.wait [#allocation3 + $0x5], 16 }
  0x71   : > { %806 = vsyncadd [#allocation3 + $0x5], 4294967280 }
  0x72   : > { %807 = dma.done.wait [#allocation3 + $0x6], 16 }
  0x73   : > { %808 = vsyncadd [#allocation3 + $0x6], 4294967280 }
  0x74   : > { %809 = dma.done.wait [#allocation3 + $0x7], 16 }
  0x75   : > { %810 = vsyncadd [#allocation3 + $0x7], 4294967280  ;;  %s483_s0 = scalar_lea.hbm %s1010_s4, %s922_s6  ;;  %s485_s24 = sshll.u32 %s133_s12, 4  ;;  %v466_v8 = vld [vmem:[#allocation2] sm:$0xff]  ;;  %vm469_vm0 = vcmask 261120   ;;  %s486_s24 = int_to_ptr.vmem [resolvable:$true] %s485_s24 }
  0x76   : > { %s487_s26 = sshll.u32 %s483_s0, 4  ;;  %v467_v9 = vld [vmem:[%s1009_s3] sm:$0xff]  ;;  %s472_s9 = scalar_lea.sflag [#allocation8], %s131_s5  ;;  %s488_s26 = int_to_ptr.hbm [resolvable:$true] %s487_s26 }
  0x77   : > { %v468_v10 = vadd.f32 %v467_v9, %v466_v8  ;;  %s755_s10 = sshra.s32 %s488_s26, 4  ;;  %s761_s14 = scalar_lea.hbm %s1010_s4, 16  ;;  %s756_s10 = int_to_ptr.hbm [resolvable:$true] %s755_s10 }
  0x78   : > { %s757_s11 = scalar_lea.hbm %s756_s10, 8  ;;  %p762_p0 = scmp.lt.s32.totalorder %s756_s10, %s1010_s4 }
  0x79   : > { %470 = vst.msk [vmem:[%s133_s12] sm:$0xff] %vm469_vm0, %v468_v10  ;;  %p758_p11 = scmp.ne.s32.totalorder %s756_s10, %s757_s11  ;;  %p763_p1 = scmp.lt.s32.totalorder %s761_s14, %s757_s11 }
  0x7b   : > { %p759_p12 = pnand %p758_p11, %p906_p4  ;;  %p764_p2 = por %p763_p1, %p762_p0 }
  0x7d   : > { %p760_p13 = pneg %p759_p12 }
  0x7f   : > { %p765_p3 = pnand %p764_p2, %p760_p13 }
  0x81   : > { %768 = shalt.err (!%p765_p3)
}
  0x82   : > { %673 = dma.vmem_to_hbm [thread:$0]  (%p906_p4), %s486_s24, 128, %s488_s26, %s472_s9  }
  0x83 PF: > { %p679_p5 = scmp.ge.s32.totalorder %s837_s23, 2  ;;  %s499_s5 = sand.u32 1, %s817_s1  }
  0x84   : > { %s500_s7 = scalar_lea.sflag [#allocation8], %s499_s5 }
  0x85   : > { %p676_p6 = pnand %p679_p5, %p913_p8 }
  0x87   : > { %p677_p7 = pneg %p676_p6 }
  0x89   : > { %812 = dma.done.wait (%p677_p7), %s500_s7, 128  }
  0x8a   : > { %814 = vsyncadd (%p677_p7), %s500_s7, 4294967168  ;;  %s26_s23 = sadd.s32 1, %s837_s23   ;;  %s1013_s1 = smov %s821_s19 }
  0x8b   : > { %p23_p9 = scmp.ge.s32.totalorder %s26_s23, 4   ;;  %s1014_s19 = smov %s825_s20 }
  0x8c   : > { %s1015_s20 = smov %s919_s30  ;;  %s1016_s21 = smov %s833_s22 }
  0x8d   : > { %s1017_s22 = smov %s1019_s25  ;;  %25 = sbr.rel (!%p23_p9) target bundleno = 10 (0xa), region = 360 }
  0x92   :  { %506 = vsyncpa [#allocation8], 1 }
  0x93   :  { %508 = vsyncpa [#allocation8 + $0x1], 1 }
  0x94   :  { %509 = vsyncmov [#allocation3] }
  0x97   :  { %s510_s27 = vpop.sfrf %509 }
  0x98   :  { %p665_p4 = scmp.ne.s32.totalorder %s510_s27, 0 }
  0x9a   :  { %514 = shalt.err (%p665_p4)  }
  0x9b   :  { %516 = vsyncmov [#allocation3 + $0x1] }
  0x9e   :  { %s517_s29 = vpop.sfrf %516 }
  0x9f   :  { %p666_p8 = scmp.ne.s32.totalorder %s517_s29, 0 }
  0xa1   :  { %521 = shalt.err (%p666_p8)  }
  0xa2   :  { %523 = vsyncmov [#allocation3 + $0x2] }
  0xa5   :  { %s524_s12 = vpop.sfrf %523 }
  0xa6   :  { %p667_p10 = scmp.ne.s32.totalorder %s524_s12, 0 }
  0xa8   :  { %528 = shalt.err (%p667_p10)  }
  0xa9   :  { %530 = vsyncmov [#allocation3 + $0x3] }
  0xac   :  { %s531_s30 = vpop.sfrf %530 }
  0xad   :  { %p668_p11 = scmp.ne.s32.totalorder %s531_s30, 0 }
  0xaf   :  { %535 = shalt.err (%p668_p11)  }
  0xb0   :  { %537 = vsyncmov [#allocation3 + $0x4] }
  0xb3   :  { %s538_s23 = vpop.sfrf %537 }
  0xb4   :  { %p669_p12 = scmp.ne.s32.totalorder %s538_s23, 0 }
  0xb6   :  { %542 = shalt.err (%p669_p12)  }
  0xb7   :  { %544 = vsyncmov [#allocation3 + $0x5] }
  0xba   :  { %s545_s2 = vpop.sfrf %544 }
  0xbb   :  { %p670_p13 = scmp.ne.s32.totalorder %s545_s2, 0 }
  0xbd   :  { %549 = shalt.err (%p670_p13)  }
  0xbe   :  { %551 = vsyncmov [#allocation3 + $0x6] }
  0xc1   :  { %s552_s3 = vpop.sfrf %551 }
  0xc2   :  { %p671_p0 = scmp.ne.s32.totalorder %s552_s3, 0 }
  0xc4   :  { %556 = shalt.err (%p671_p0)  }
  0xc5   :  { %558 = vsyncmov [#allocation3 + $0x7] }
  0xc8   :  { %s559_s4 = vpop.sfrf %558 }
  0xc9   :  { %p672_p1 = scmp.ne.s32.totalorder %s559_s4, 0 }
  0xcb   :  { %563 = shalt.err (%p672_p1)  }

</bundles_post_ra>
